<compile_context>
chip_gen: v7x
topology: tpu7x:2x2x1
jax: 0.10.0
libtpu: 0.0.40
codegen_flags: <defaults>
</compile_context>

<pallas_src>
import functools

import jax
import jax.numpy as jnp
from jax.experimental import pallas as pl
from jax.experimental.pallas import tpu as pltpu

_LANE_CHOICES = (1024, 512, 256, 128)   # multiple-of-128 column widths, widest first
_TARGET_BLOCK_BYTES = 8 * 1024 * 1024   # ~8 MiB per pipeline buffer (all dtypes)
_MIN_GRID_BLOCKS = 4                    # let both v7x TensorCores stream


def _quantize_kernel(x_ref, o_ref, *, scale, inv_scale):
    # f32 intermediate so bf16/fp16 inputs keep full mantissa through the
    # scale/round; jnp.round is round-half-to-even, matching torch.round.
    x = x_ref[...].astype(jnp.float32)
    o_ref[...] = (jnp.round(x * scale) * inv_scale).astype(o_ref.dtype)


def _pick_cols(n: int):
    """Widest multiple-of-128 lane width that divides n exactly (else None)."""
    for c in _LANE_CHOICES:
        if n % c == 0:
            return c
    return None


def _pick_block_rows(rows: int, cols: int, itemsize: int) -> int:
    # Sublane multiple for this dtype: f32 -> 8, bf16/fp16 -> 16, int8/fp8 -> 32.
    sub = max(8, 32 // max(1, itemsize))
    if rows <= sub:
        return rows  # full-dim block (always legal)
    # dtype-scaled target: each DMA buffer moves ~_TARGET_BLOCK_BYTES.
    target = max(sub, (_TARGET_BLOCK_BYTES // (cols * itemsize)) // sub * sub)
    # Keep >= _MIN_GRID_BLOCKS grid steps so the "parallel" axis can be sharded
    # across both v7x TensorCores instead of collapsing to a single block.
    split = -(-rows // _MIN_GRID_BLOCKS)        # ceil(rows / MIN_GRID_BLOCKS)
    split = -(-split // sub) * sub              # ceil to sublane multiple
    return max(sub, min(target, split))


def _run_2d(flat: jax.Array, scale: float, inv_scale: float, cols: int,
            alias_input: bool) -> jax.Array:
    """Quantize a flat array whose size is an exact multiple of `cols`."""
    n = flat.size
    rows = n // cols
    x2d = flat.reshape(rows, cols)
    itemsize = x2d.dtype.itemsize
    block_rows = _pick_block_rows(rows, cols, itemsize)
    grid = (pl.cdiv(rows, block_rows),)

    block_bytes = block_rows * cols * itemsize
    # 2 double-buffered inputs + 2 double-buffered outputs + headroom;
    # 40 MiB for 8 MiB tiles -> safe on v7x (64 MiB) and tiny on v5e/v6e.
    vmem_limit = int(min(96 * 2 ** 20, max(32 * 2 ** 20, 4 * block_bytes + 8 * 2 ** 20)))

    kernel = functools.partial(_quantize_kernel, scale=scale, inv_scale=inv_scale)

    out2d = pl.pallas_call(
        kernel,
        out_shape=jax.ShapeDtypeStruct(x2d.shape, x2d.dtype),
        grid=grid,
        in_specs=[pl.BlockSpec((block_rows, cols), lambda i: (i, 0))],
        out_specs=pl.BlockSpec((block_rows, cols), lambda i: (i, 0)),
        input_output_aliases={0: 0} if alias_input else {},
        compiler_params=pltpu.CompilerParams(
            dimension_semantics=("parallel",),
            vmem_limit_bytes=vmem_limit,
        ),
    )(x2d)
    return out2d.reshape(-1)


def quantize_pallas(x: jax.Array, num_of_bits: int = 4, *,
                    alias_input: bool = False) -> jax.Array:
    """Elementwise fake-quantization: round(x * n) / n with n = 2**(bits-1).

    Set alias_input=True only when the caller donates `x` (e.g. via
    jax.jit(..., donate_argnums)); it lets XLA reuse the input HBM buffer.
    """
    scale = float(2 ** (num_of_bits - 1))
    inv_scale = 1.0 / scale  # exact: scale is a power of two

    orig_shape = x.shape
    n = x.size
    if n == 0:
        return x

    flat = x.reshape(-1)

    cols = _pick_cols(n)
    if cols is not None:
        # Common case: zero-copy reshape, no padding, no trailing slice.
        return _run_2d(flat, scale, inv_scale, cols, alias_input).reshape(orig_shape)

    if n < 128:
        # Tiny ragged input: a single (1, n) full-dims block.
        return _run_2d(flat, scale, inv_scale, n, alias_input).reshape(orig_shape)

    # Ragged size (>= 128, not a multiple of 128): run the 128-aligned bulk
    # through the kernel (zero-copy reshape) and the <128-element tail through
    # plain jnp, then stitch.  One extra pass over the bulk (concatenate) at
    # worst -- still cheaper than the old pad + slice (two extra full passes).
    rem = n % 128
    bulk = n - rem
    bulk_cols = _pick_cols(bulk)  # 128 always divides bulk
    head = _run_2d(flat[:bulk], scale, inv_scale, bulk_cols, alias_input)
    tail = (jnp.round(flat[bulk:].astype(jnp.float32) * scale)
            * inv_scale).astype(x.dtype)
    return jnp.concatenate([head, tail]).reshape(orig_shape)


def _reference(x, num_of_bits):
    n = 2.0 ** (num_of_bits - 1)
    return (jnp.round(x.astype(jnp.float32) * n) / n).astype(x.dtype)


if __name__ == "__main__":
    key = jax.random.PRNGKey(0)
    num_of_bits = 4

    # Small NCHW input consistent with a conv-activation quantizer.
    x = jax.random.normal(key, (2, 4, 16, 16), dtype=jnp.float32)
    out = jax.block_until_ready(quantize_pallas(x, num_of_bits))
    ref = _reference(x, num_of_bits)
    assert out.shape == x.shape and out.dtype == x.dtype
    assert jnp.array_equal(out, ref)

    # bf16 input exercises the dtype-scaled tiling and f32 intermediate.
    xb = jax.random.normal(key, (8, 4, 16, 16), dtype=jnp.bfloat16)
    outb = jax.block_until_ready(quantize_pallas(xb, num_of_bits))
    assert outb.dtype == xb.dtype
    assert jnp.array_equal(outb, _reference(xb, num_of_bits))

    # Ragged size exercises the aligned-bulk + jnp-tail fallback (no padding).
    xr = jax.random.normal(key, (5, 7, 9), dtype=jnp.float32)  # 315 elements
    outr = jax.block_until_ready(quantize_pallas(xr, num_of_bits))
    assert outr.shape == xr.shape
    assert jnp.array_equal(outr, _reference(xr, num_of_bits))

    print("KERNEL_OK")
</pallas_src>

<mosaic_0001>
module attributes {stable_mosaic.version = 11 : i64} {
  func.func @_quantize_kernel(%arg0: i32, %arg1: memref<2x1024xf32, #tpu.memory_space<vmem>>, %arg2: memref<2x1024xf32, #tpu.memory_space<vmem>>) attributes {dimension_semantics = [#tpu.dimension_semantics<parallel>], iteration_bounds = array<i64: 1>, scalar_prefetch = 0 : i64, scratch_operands = 0 : i64, tpu.core_type = #tpu.core_type<tc>, window_params = [{transform_indices = @transform_0, window_bounds = array<i64: 2, 1024>}, {transform_indices = @transform_1, window_bounds = array<i64: 2, 1024>}]} {
    %c0 = arith.constant 0 : index
    %c0_0 = arith.constant 0 : index
    %0 = vector.load %arg1[%c0, %c0_0] : memref<2x1024xf32, #tpu.memory_space<vmem>>, vector<2x1024xf32>
    %cst = arith.constant 8.000000e+00 : f32
    %1 = vector.broadcast %cst : f32 to vector<2x1024xf32>
    %2 = arith.mulf %0, %1 : vector<2x1024xf32>
    %3 = math.roundeven %2 : vector<2x1024xf32>
    %cst_1 = arith.constant 1.250000e-01 : f32
    %4 = vector.broadcast %cst_1 : f32 to vector<2x1024xf32>
    %5 = arith.mulf %3, %4 : vector<2x1024xf32>
    %c0_2 = arith.constant 0 : index
    %c0_3 = arith.constant 0 : index
    %6 = vector.load %arg2[%c0_2, %c0_3] : memref<2x1024xf32, #tpu.memory_space<vmem>>, vector<2x1024xf32>
    tpu.vector_store %arg2[%c0_2, %c0_3], %5 {strides = array<i32>} : memref<2x1024xf32, #tpu.memory_space<vmem>>, vector<2x1024xf32>,
    return
  }
  func.func @transform_0(%arg0: i32) -> (i32, i32) {
    %c0_i32 = arith.constant 0 : i32
    %c0_i32_0 = arith.constant 0 : i32
    return %arg0, %c0_i32 : i32, i32
  }
  func.func @transform_1(%arg0: i32) -> (i32, i32) {
    %c0_i32 = arith.constant 0 : i32
    %c0_i32_0 = arith.constant 0 : i32
    return %arg0, %c0_i32 : i32, i32
  }
}

</mosaic_0001>

<bundles_post_ra>
// kernel: tpu_custom_call.1
= control target key start
LH: loop header
LB: loop body
LE: loop exit
PB: predicated region body
PF: predicated region fallthrough
CT: control target
= control target key end

     0   :  { %6 = vsyncpa [#allocation3], 0  ;;  %s134_s0 = inlined_call_operand.hbm [shape: f32[2,1024], index: 0, kind: input, shape index: {}]   ;;  %s135_s1 = inlined_call_operand.hbm [shape: f32[2,1024], index: 1, kind: output, shape index: {}]  }
   0x1   :  { %7 = vsyncpa [#allocation4], 0  ;;  %s98_s6 = smov [#allocation2]   ;;  %s50_s10 = scalar_lea.hbm %s134_s0, 256 }
   0x2   :  { %s14_s7 = sshll.u32 %s98_s6, 4  ;;  %p51_p0 = scmp.ne.s32.totalorder %s134_s0, %s50_s10  ;;  %s15_s7 = int_to_ptr.vmem [resolvable:$true] %s14_s7 }
   0x3   :  { %p54_p1 = scmp.lt.u32.totalorder %s50_s10, %s134_s0 }
   0x5   :  { %p56_p2 = pnand %p54_p1, %p51_p0 }
   0x7   :  { %59 = shalt.err (!%p56_p2)
}
   0x8   :  { %s60_s15 = scalar_lea.vmem %s15_s7, 256  ;;  %p65_p4 = scmp.lt.s32.totalorder %s15_s7, %s15_s7 }
   0x9   :  { %p61_p3 = scmp.ne.s32.totalorder %s15_s7, %s60_s15  ;;  %p66_p5 = scmp.lt.s32.totalorder %s60_s15, %s60_s15 }
   0xb   :  { %p67_p6 = por %p66_p5, %p65_p4 }
   0xd   :  { %p68_p7 = pnand %p67_p6, %p61_p3 }
   0xf   :  { %71 = shalt.err (!%p68_p7)
}
  0x10   :  { %17 = dma.hbm_to_vmem [thread:$0]  %s134_s0, 256, %s15_s7, [#allocation3]  }
  0x11   :  { %94 = dma.done.wait [#allocation3], 256  }
  0x12   :  { %95 = vsyncadd [#allocation3], 4294967040  ;;  %v21_v0 = vld [vmem:[#allocation2] sm:$0xff]  ;;  %v22_v1 = vld [vmem:[#allocation2 + $0x8] sm:$0xff]  ;;  %s99_s18 = smov [#allocation5]  }
  0x13   :  { %v23_v2 = vmul.f32 8.0, %v21_v0  ;;  %v24_v3 = vmul.f32 8.0, %v22_v1  ;;  %s37_s19 = sshll.u32 %s99_s18, 4  ;;  %s38_s19 = int_to_ptr.vmem [resolvable:$true] %s37_s19 }
  0x14   :  { %s72_s20 = scalar_lea.vmem %s38_s19, 256  ;;  %p77_p9 = scmp.lt.s32.totalorder %s38_s19, %s38_s19 }
  0x15   :  { %v46_v4 = vround.rtne.f32 %v23_v2  ;;  %v47_v5 = vround.rtne.f32 %v24_v3  ;;  %p73_p8 = scmp.ne.s32.totalorder %s38_s19, %s72_s20  ;;  %p78_p10 = scmp.lt.s32.totalorder %s72_s20, %s72_s20 }
  0x17   :  { %v27_v6 = vmul.f32 0.125, %v46_v4  ;;  %v28_v7 = vmul.f32 0.125, %v47_v5  ;;  %p79_p11 = por %p78_p10, %p77_p9 }
  0x19   :  { %29 = vst [vmem:[#allocation5] sm:$0xff] %v27_v6  ;;  %30 = vst [vmem:[#allocation5 + $0x8] sm:$0xff] %v28_v7  ;;  %p80_p12 = pnand %p79_p11, %p73_p8 }
  0x1b   :  { %83 = shalt.err (!%p80_p12)
}
  0x1c   :  { %s84_s22 = scalar_lea.hbm %s135_s1, 256 }
  0x1d   :  { %p85_p13 = scmp.ne.s32.totalorder %s135_s1, %s84_s22  ;;  %p88_p0 = scmp.lt.u32.totalorder %s84_s22, %s135_s1 }
  0x1f   :  { %p90_p1 = pnand %p88_p0, %p85_p13 }
  0x21   :  { %93 = shalt.err (!%p90_p1)
}
  0x22   :  { %40 = dma.vmem_to_hbm [thread:$0]  %s38_s19, 256, %s135_s1, [#allocation4]  }
  0x23   :  { %96 = dma.done.wait [#allocation4], 256  }
  0x24   :  { %97 = vsyncadd [#allocation4], 4294967040 }
  0x25   :  { %44 = vsyncpa [#allocation3], 1 }
  0x26   :  { %45 = vsyncpa [#allocation4], 1 }

</bundles_post_ra>
